<compile_context>
chip_gen: v6e
topology: v6e:2x2x1
jax: 0.10.0
libtpu: 0.0.40
codegen_flags: <defaults>
</compile_context>

<pallas_src>
import functools

import jax
import jax.numpy as jnp
from jax.experimental import pallas as pl
from jax.experimental.pallas import tpu as pltpu


def _round_up(x, m):
    return ((x + m - 1) // m) * m


def _se_kernel(x_ref, w1_ref, w2_ref, o_ref, *, inv_hw):
    # x_ref : (Bt, C, HW)   w1_ref : (C, 6)   w2_ref : (6, C)   o_ref : (Bt, C, HW)

    # Pass 1 — squeeze: global average pool over the spatial (lane) axis,
    # accumulated in f32.  Read the ref directly (no long-lived bound value).
    y = jnp.sum(x_ref[...], axis=-1, dtype=jnp.float32) * inv_hw          # (Bt, C)

    # Excitation: Linear(C->6, no bias) -> ReLU -> Linear(6->C, no bias) -> Sigmoid.
    # Tiny matmuls; each output row depends only on its own input row, so a
    # garbage OOB-read row in a ragged last batch tile cannot contaminate
    # valid rows (and its output write is dropped anyway).
    h = jnp.dot(y, w1_ref[...], preferred_element_type=jnp.float32)       # (Bt, 6)
    h = jnp.maximum(h, 0.0)
    s = jnp.dot(h, w2_ref[...], preferred_element_type=jnp.float32)       # (Bt, C)
    s = 1.0 / (1.0 + jnp.exp(-s))                                         # sigmoid

    # Pass 2 — scale: re-read the ref and do a single fused streaming multiply
    # in the output dtype, broadcasting the per-(B,C) gate over the lane axis.
    o_ref[...] = (x_ref[...] * s.astype(o_ref.dtype)[:, :, None]).astype(o_ref.dtype)


def se_layer(x, w_fc1, w_fc2):
    """SELayer forward.

    Args:
      x:     (B, C, H, W)  NCHW input.
      w_fc1: (6, C)  first Linear weight (PyTorch layout: out_features x in_features).
      w_fc2: (C, 6)  second Linear weight.
    Returns:
      (B, C, H, W), same dtype as x.
    """
    B, C, H, W = x.shape
    hw = H * W
    itemsize = jnp.dtype(x.dtype).itemsize

    # Free, contiguous reshape: lane-dense last dim = H*W.
    x_r = x.reshape(B, C, hw)

    # --- VMEM budgeting (generation-aware) -------------------------------
    # True VMEM footprint of one (C, HW) slab: (sublane, 128) tiling means C
    # rounds up to the sublane count (8 rows f32, 16 bf16, 32 int8) and HW
    # rounds up to 128 lanes.
    sublane = max(8, 32 // itemsize)
    per_b = _round_up(C, sublane) * _round_up(hw, 128) * itemsize

    try:
        vmem_cap = int(pltpu.get_tpu_info().vmem_capacity_bytes)
    except Exception:
        vmem_cap = 64 << 20                      # conservative: v7x per-TC
    # ~75% of physical VMEM, capped at 100 MiB (v5e/v6e have 128 MiB physical).
    vmem_limit = min((vmem_cap * 3) // 4, 100 << 20)
    # One block <= limit/6: 2x double-buffered input + 2x output blocks plus
    # resident weights and internal scratch stay well inside the limit.
    block_budget = max(per_b, vmem_limit // 6)

    # At least 2 grid steps so both v7x TensorCores get work on the "parallel"
    # batch axis; otherwise as many batch rows per block as the budget allows.
    bt_cap = max(1, pl.cdiv(B, 2))
    bt = max(1, min(bt_cap, block_budget // per_b))
    n_blocks = pl.cdiv(B, bt)                    # ragged last block handled by Pallas

    # Pre-transpose weights so the kernel does plain (Bt,K)@(K,N) matmuls;
    # constant index_maps keep them resident in VMEM across all grid steps.
    w1 = jnp.asarray(w_fc1, jnp.float32).T       # (C, 6)
    w2 = jnp.asarray(w_fc2, jnp.float32).T       # (6, C)

    kernel = functools.partial(_se_kernel, inv_hw=1.0 / float(hw))

    grid_spec = pltpu.PrefetchScalarGridSpec(
        num_scalar_prefetch=0,
        grid=(n_blocks,),
        in_specs=[
            # Last two block dims equal the full (C, HW) extents -> legal layout,
            # lane-dense unmasked stores when HW is a multiple of 128.
            pl.BlockSpec((bt, C, hw), lambda b: (b, 0, 0)),   # streamed x tile
            pl.BlockSpec((C, 6), lambda b: (0, 0)),           # resident weights
            pl.BlockSpec((6, C), lambda b: (0, 0)),
        ],
        out_specs=pl.BlockSpec((bt, C, hw), lambda b: (b, 0, 0)),
    )

    # Advisory cost: purely HBM-bandwidth-bound streaming op (read + write x,
    # plus the one-time weight reads).
    cost = pl.CostEstimate(
        flops=2 * B * C * hw + 2 * B * (C * 6 + 6 * C),
        transcendentals=B * C,
        bytes_accessed=2 * B * C * hw * itemsize + 2 * (6 * C) * 4,
    )

    out = pl.pallas_call(
        kernel,
        out_shape=jax.ShapeDtypeStruct((B, C, hw), x.dtype),
        grid_spec=grid_spec,
        compiler_params=pltpu.CompilerParams(
            dimension_semantics=("parallel",),   # independent batch tiles -> megacore on v7x
            vmem_limit_bytes=int(vmem_limit),
        ),
        cost_estimate=cost,
    )(x_r, w1, w2)

    return out.reshape(B, C, H, W)


if __name__ == "__main__":
    B, C, H, W = 2, 4, 16, 16
    key = jax.random.PRNGKey(0)
    kx, k1, k2 = jax.random.split(key, 3)

    x = jax.random.normal(kx, (B, C, H, W), dtype=jnp.float32)
    # deterministic synthetic weights matching nn.Linear(channel, 6) / nn.Linear(6, channel)
    w_fc1 = jax.random.normal(k1, (6, C), dtype=jnp.float32) * 0.5   # (out=6, in=C)
    w_fc2 = jax.random.normal(k2, (C, 6), dtype=jnp.float32) * 0.5   # (out=C, in=6)

    out = se_layer(x, w_fc1, w_fc2)
    jax.block_until_ready(out)

    # pure-JAX reference check (dtype-aware tolerance: f32 here)
    y_ref = jnp.mean(x, axis=(2, 3))                       # (B, C)
    h_ref = jnp.maximum(y_ref @ w_fc1.T, 0.0)              # (B, 6)
    s_ref = jax.nn.sigmoid(h_ref @ w_fc2.T)                # (B, C)
    ref = x * s_ref[:, :, None, None]
    tol = 1e-5 if x.dtype == jnp.float32 else 2e-2
    assert out.shape == ref.shape
    assert jnp.allclose(out, ref, atol=tol, rtol=tol), "mismatch vs reference"

    print("KERNEL_OK")
</pallas_src>

<mosaic_0001>
module attributes {stable_mosaic.version = 11 : i64} {
  func.func @_se_kernel(%arg0: i32, %arg1: memref<1x4x256xf32, #tpu.memory_space<vmem>>, %arg2: memref<4x6xf32, #tpu.memory_space<vmem>>, %arg3: memref<6x4xf32, #tpu.memory_space<vmem>>, %arg4: memref<1x4x256xf32, #tpu.memory_space<vmem>>) attributes {dimension_semantics = [#tpu.dimension_semantics<parallel>], iteration_bounds = array<i64: 2>, scalar_prefetch = 0 : i64, scratch_operands = 0 : i64, tpu.core_type = #tpu.core_type<tc>, window_params = [{transform_indices = @transform_0, window_bounds = array<i64: 1, 4, 256>}, {pipeline_mode = #tpu.pipeline_mode<synchronous>, transform_indices = @transform_1, window_bounds = array<i64: 4, 6>}, {pipeline_mode = #tpu.pipeline_mode<synchronous>, transform_indices = @transform_2, window_bounds = array<i64: 6, 4>}, {transform_indices = @transform_3, window_bounds = array<i64: 1, 4, 256>}]} {
    %c0 = arith.constant 0 : index
    %c0_0 = arith.constant 0 : index
    %c0_1 = arith.constant 0 : index
    %0 = vector.load %arg1[%c0, %c0_0, %c0_1] : memref<1x4x256xf32, #tpu.memory_space<vmem>>, vector<1x4x256xf32>
    %cst = arith.constant dense<0.000000e+00> : vector<1x4xf32>
    %1 = vector.multi_reduction <add>, %0, %cst [2] : vector<1x4x256xf32> to vector<1x4xf32>
    %cst_2 = arith.constant 3.906250e-03 : f32
    %2 = vector.broadcast %cst_2 : f32 to vector<1x4xf32>
    %3 = arith.mulf %1, %2 : vector<1x4xf32>
    %c0_3 = arith.constant 0 : index
    %c0_4 = arith.constant 0 : index
    %4 = vector.load %arg2[%c0_3, %c0_4] : memref<4x6xf32, #tpu.memory_space<vmem>>, vector<4x6xf32>
    %cst_5 = arith.constant dense<0.000000e+00> : vector<1x6xf32>
    %5 = tpu.matmul %3, %4, %cst_5 {dimension_numbers = #tpu.dot_dimension_numbers<[1], [0], [0], [1], [0, 0, 1, 1], [], []>} : vector<1x4xf32>, vector<4x6xf32>, vector<1x6xf32> -> vector<1x6xf32>
    %cst_6 = arith.constant 0.000000e+00 : f32
    %6 = vector.broadcast %cst_6 : f32 to vector<1x6xf32>
    %7 = arith.maximumf %5, %6 : vector<1x6xf32>
    %c0_7 = arith.constant 0 : index
    %c0_8 = arith.constant 0 : index
    %8 = vector.load %arg3[%c0_7, %c0_8] : memref<6x4xf32, #tpu.memory_space<vmem>>, vector<6x4xf32>
    %cst_9 = arith.constant dense<0.000000e+00> : vector<1x4xf32>
    %9 = tpu.matmul %7, %8, %cst_9 {dimension_numbers = #tpu.dot_dimension_numbers<[1], [0], [0], [1], [0, 0, 1, 1], [], []>} : vector<1x6xf32>, vector<6x4xf32>, vector<1x4xf32> -> vector<1x4xf32>
    %cst_10 = arith.constant 0.000000e+00 : f32
    %10 = vector.broadcast %cst_10 : f32 to vector<1x4xf32>
    %11 = arith.subf %10, %9 : vector<1x4xf32>
    %12 = math.exp %11 : vector<1x4xf32>
    %cst_11 = arith.constant 1.000000e+00 : f32
    %13 = vector.broadcast %cst_11 : f32 to vector<1x4xf32>
    %14 = arith.addf %13, %12 : vector<1x4xf32>
    %cst_12 = arith.constant 1.000000e+00 : f32
    %15 = vector.broadcast %cst_12 : f32 to vector<1x4xf32>
    %16 = arith.divf %15, %14 : vector<1x4xf32>
    %c0_13 = arith.constant 0 : index
    %c0_14 = arith.constant 0 : index
    %c0_15 = arith.constant 0 : index
    %17 = vector.load %arg1[%c0_13, %c0_14, %c0_15] : memref<1x4x256xf32, #tpu.memory_space<vmem>>, vector<1x4x256xf32>
    %18 = vector.shape_cast %16 : vector<1x4xf32> to vector<1x4x1xf32>
    %19 = vector.broadcast %18 : vector<1x4x1xf32> to vector<1x4x256xf32>
    %20 = arith.mulf %17, %19 : vector<1x4x256xf32>
    %c0_16 = arith.constant 0 : index
    %c0_17 = arith.constant 0 : index
    %c0_18 = arith.constant 0 : index
    %21 = vector.load %arg4[%c0_16, %c0_17, %c0_18] : memref<1x4x256xf32, #tpu.memory_space<vmem>>, vector<1x4x256xf32>
    tpu.vector_store %arg4[%c0_16, %c0_17, %c0_18], %20 {strides = array<i32>} : memref<1x4x256xf32, #tpu.memory_space<vmem>>, vector<1x4x256xf32>,
    return
  }
  func.func @transform_0(%arg0: i32) -> (i32, i32, i32) {
    %c0_i32 = arith.constant 0 : i32
    %c0_i32_0 = arith.constant 0 : i32
    %c0_i32_1 = arith.constant 0 : i32
    return %arg0, %c0_i32, %c0_i32_0 : i32, i32, i32
  }
  func.func @transform_1(%arg0: i32) -> (i32, i32) {
    %c0_i32 = arith.constant 0 : i32
    %c0_i32_0 = arith.constant 0 : i32
    %c0_i32_1 = arith.constant 0 : i32
    return %c0_i32, %c0_i32_0 : i32, i32
  }
  func.func @transform_2(%arg0: i32) -> (i32, i32) {
    %c0_i32 = arith.constant 0 : i32
    %c0_i32_0 = arith.constant 0 : i32
    %c0_i32_1 = arith.constant 0 : i32
    return %c0_i32, %c0_i32_0 : i32, i32
  }
  func.func @transform_3(%arg0: i32) -> (i32, i32, i32) {
    %c0_i32 = arith.constant 0 : i32
    %c0_i32_0 = arith.constant 0 : i32
    %c0_i32_1 = arith.constant 0 : i32
    return %arg0, %c0_i32, %c0_i32_0 : i32, i32, i32
  }
}

</mosaic_0001>

<bundles_post_ra>
// kernel: tpu_custom_call.1
= control target key start
LH: loop header
LB: loop body
LE: loop exit
PB: predicated region body
PF: predicated region fallthrough
CT: control target
= control target key end

     0   :  { %8 = vsyncpa [#allocation3], 0  ;;  %s829_s0 = inlined_call_operand.hbm [shape: f32[2,4,256], index: 0, kind: input, shape index: {}]   ;;  %s830_s1 = inlined_call_operand.vmem [shape: f32[4,6], index: 1, kind: input, shape index: {}]   ;;  %s831_s2 = inlined_call_operand.vmem [shape: f32[6,4], index: 2, kind: input, shape index: {}]   ;;  %s832_s3 = inlined_call_operand.hbm [shape: f32[2,4,256], index: 3, kind: output, shape index: {}]  }
   0x1   :  { %10 = vsyncpa [#allocation3 + $0x1], 0 }
   0x2   :  { %11 = vsyncpa [#allocation4], 0 }
   0x3   :  { %13 = vsyncpa [#allocation4 + $0x1], 0  ;;  %s678_s12 = smov 0   ;;  %s680_s13 = smov 0  }
   0x4   :  { %s682_s14 = smov 0   ;;  %s684_s15 = smov 0  }
   0x5 LB: > { %s699_s16 = sadd.s32 4294967295, %s651_s15   ;;  %s471_s17 = sadd.s32 4294967294, %s651_s15   ;;  %s651_s15 = sphi %s684_s15, %s849_s15   ;;  %s647_s14 = sphi %s682_s14, %s848_s14   ;;  %s643_s13 = sphi %s680_s13, %s847_s13   ;;  %s639_s12 = sphi %s678_s12, %s846_s12  }
   0x6   : > { %s703_s18 = sadd.s32 1, %s651_s15   ;;  %s26_s19 = sadd.s32 1, %s647_s14 }
   0x7   : > { %s23_s20 = ssub.s32 %s651_s15, %s703_s18  ;;  %p33_p0 = scmp.ne.s32.totalorder %s647_s14, %s643_s13 }
   0x8   : > { %p24_p1 = scmp.eq.s32.totalorder %s23_s20, 0  ;;  %p34_p2 = scmp.eq.s32.totalorder %s651_s15, 0 }
   0x9   : > { %p39_p3 = scmp.ne.s32.totalorder %s643_s13, %s639_s12  ;;  %p40_p4 = scmp.eq.s32.totalorder %s699_s16, 0 }
   0xa   : > { %s715_s21 = scalar_select %p24_p1, %s647_s14, %s26_s19  }
   0xb   : > { %p717_p5 = por %p34_p2, %p33_p0  ;;  %p721_p6 = por %p40_p4, %p39_p3 }
   0xc   : > { %p105_p7 = scmp.eq.s32.totalorder %s699_s16, 1  ;;  %p111_p8 = scmp.eq.s32.totalorder %s471_s17, 1 }
   0xd   : > { %s836_s23 = scalar_select %p721_p6, 1, 0 }
   0xe   : > { %p517_p10 = scmp.lt.s32.totalorder %s651_s15, 2  ;;  %p728_p11 = por %p105_p7, %p33_p0 }
   0xf   : > { %p732_p12 = por %p111_p8, %p39_p3  ;;  %s137_s26 = sand.u32 1, %s647_s14  }
  0x10   : > { %s837_s24 = scalar_select %p728_p11, 1, 0 }
  0x11   : > { %s838_s25 = scalar_select %p732_p12, 1, 0 }
  0x12   : > { %s489_s27 = sshll.u32 %s651_s15, 7  ;;  %s474_s28 = sshll.u32 %s137_s26, 3 }
  0x13   : > { %s741_s4 = scalar_lea.hbm %s829_s0, %s489_s27  ;;  %s141_s5 = scalar_lea.vmem [#allocation2], %s474_s28 }
  0x14   : > { %s149_s6 = sshll.u32 %s141_s5, 4  ;;  %p745_p13 = pnand %p517_p10, %p717_p5  ;;  %s749_s6 = int_to_ptr.vmem [resolvable:$true] %s149_s6 }
  0x15   : > { %s138_s8 = scalar_lea.sflag [#allocation3], %s137_s26  ;;  %s559_s9 = scalar_lea.hbm %s741_s4, 128 }
  0x16   : > { %p560_p2 = scmp.ne.s32.totalorder %s741_s4, %s559_s9  ;;  %p561_p3 = pneg %p745_p13 }
  0x17   : > { %s564_s17 = scalar_lea.hbm %s829_s0, 256  ;;  %p565_p5 = scmp.lt.s32.totalorder %s741_s4, %s829_s0 }
  0x18   : > { %p562_p4 = pnand %p561_p3, %p560_p2  ;;  %p566_p8 = scmp.lt.s32.totalorder %s564_s17, %s559_s9 }
  0x1a   : > { %p563_p7 = pneg %p562_p4  ;;  %p567_p10 = por %p566_p8, %p565_p5 }
  0x1c   : > { %p568_p9 = pnand %p567_p10, %p563_p7 }
  0x1e   : > { %571 = shalt.err (!%p568_p9)
}
  0x1f   : > { %s572_s22 = scalar_lea.vmem %s749_s6, 128  ;;  %s653_s26 = smov [#allocation2]  }
  0x20   : > { %p573_p0 = scmp.ne.s32.totalorder %s749_s6, %s572_s22  ;;  %s577_s27 = sshll.u32 %s653_s26, 4  ;;  %s578_s27 = int_to_ptr.vmem [resolvable:$false] %s577_s27 }
  0x21   : > { %s579_s28 = scalar_lea.vmem %s578_s27, 256  ;;  %p580_p4 = scmp.lt.s32.totalorder %s749_s6, %s578_s27 }
  0x22   : > { %p575_p1 = pnand %p573_p0, %p561_p3  ;;  %p581_p12 = scmp.lt.s32.totalorder %s579_s28, %s572_s22 }
  0x24   : > { %p576_p2 = pneg %p575_p1  ;;  %p582_p11 = por %p581_p12, %p580_p4 }
  0x26   : > { %p583_p6 = pnand %p582_p11, %p576_p2 }
  0x28   : > { %586 = shalt.err (!%p583_p6)
}
  0x29   : > { %512 = dma.hbm_to_vmem [thread:$0]  (!%p745_p13), %s741_s4, 128, %s749_s6, %s138_s8  }
  0x2a   : > { %p840_p9 = scmp.lt.s32.totalorder %s651_s15, 3  ;;  %p841_p7 = scmp.ge.s32.totalorder %s651_s15, 1 }
  0x2c   : > { %p155_p0 = pnand %p841_p7, %p840_p9 }
  0x2d   : > { %s776_s29 = sand.u32 (!%p155_p0), 1, %s643_s13   ;;  %p842_p6 = scmp.ne.s32.totalorder (!%p155_p0), %s836_s23, 0 }
  0x2e   : > { %158 = sbr.rel (%p155_p0) target bundleno = 756 (0x2f4), region = 32  ;;  %s478_s30 = sshll.u32 (!%p155_p0), %s776_s29, 3 }
  0x2f   : > { %s161_s5 = scalar_lea.sflag (!%p155_p0), [#allocation3], %s776_s29  ;;  %s164_s7 = scalar_lea.vmem (!%p155_p0), [#allocation2], %s478_s30 }
  0x33   : > { %630 = dma.done.wait (%p842_p6), %s161_s5, 128  }
  0x34   : > { %632 = vsyncadd (%p842_p6), %s161_s5, 4294967168  ;;  %vm191_vm0 = vcmask 1043456   ;;  %v187_v0 = vld [vmem:[%s164_s7] sm:$0xff]  ;;  %v654_v5 = vmov 0.0   ;;  %vm655_vm1 = vmmov 0   ;;  %v200_v7 = vlaneseq  ;;  %s490_s9 = sshll.u32 %s699_s16, 7 }
  0x35   : > { %v189_v1 = vcombine.high %v187_v0, %v187_v0  ;;  %v192_v2 = vsel %vm191_vm0, %v187_v0, 0.0  ;;  %495 = vmatprep.subr.mxu0 %v654_v5  ;;  %v198_v6 = vld [vmem:[%s830_s1] sm:$0xf]  ;;  %500 = vmatprep.subr.mxu1 %v654_v5  ;;  %vm206_vm2 = vcmask 31744   ;;  %vm288_vm3 = vcmask 1045504   ;;  %s186_s10 = scalar_lea.vmem [#allocation5], %s478_s30  ;;  %s399_s20 = scalar_lea.hbm %s832_s3, %s490_s9 }
  0x36   : > { %496 = vmatpush3.msk.msra.mxu0 %vm191_vm0, %v198_v6  ;;  %497 = vmatprep.mubr.msk.f32.mxu0 %vm655_vm1, %v654_v5  ;;  %v201_v8 = vand.u32 127, %v200_v7  ;;  %v203_v9 = vshrl.u32 %v200_v7, 7  ;;  %v283_v14 = vld [vmem:[%s831_s2] sm:$0x3f]  ;;  %vm284_vm4 = vcmask 48128   ;;  %s401_s11 = sshll.u32 %s186_s10, 4  ;;  %s402_s11 = int_to_ptr.vmem [resolvable:$true] %s401_s11 }
  0x37   : > { %v193_v3 = vsel %vm191_vm0, %v189_v1, 0.0  ;;  %502 = vmatprep.mubr.msk.f32.mxu1 %vm655_vm1, %v654_v5  ;;  %501 = vmatpush3.msk.msra.mxu1 %vm288_vm3, %v283_v14  ;;  %v656_v27 = vmov 839922192   ;;  %s387_s22 = scalar_lea.sflag [#allocation4], %s776_s29  ;;  %s587_s26 = scalar_lea.vmem %s402_s11, 128 }
  0x38   : > { %v194_v4 = vadd.f32 %v193_v3, %v192_v2  ;;  %v204_v10 = vsub.s32 %v201_v8, %v203_v9  ;;  %v370_v24 = vsub.s32 0, %v203_v9  ;;  %v377_v28 = vunpack.c.l.s4 %v656_v27  ;;  %p588_p11 = scmp.ne.s32.totalorder %s402_s11, %s587_s26  ;;  %p843_p12 = scmp.ne.s32.totalorder %s837_s24, 0 }
  0x39   : > { %s657_s27 = smov [#allocation5]  }
  0x3a   : > { %195 = vadd.xlane.f32.xlu0 %v194_v4  ;;  %v378_v29 = vunpack.c.0.s8 %v377_v28  ;;  %p589_p13 = pnand %p588_p11, %p843_p12  ;;  %s591_s28 = sshll.u32 %s657_s27, 4  ;;  %s592_s28 = int_to_ptr.vmem [resolvable:$false] %s591_s28 }
  0x3b   : > { %s593_s16 = scalar_lea.vmem %s592_s28, 256  ;;  %p594_p3 = scmp.lt.s32.totalorder %s402_s11, %s592_s28 }
  0x3c   : > { %v381_v30 = vsub.s32 %v378_v29, %v203_v9  ;;  %p590_p1 = pneg %p589_p13  ;;  %p595_p5 = scmp.lt.s32.totalorder %s593_s16, %s587_s26 }
  0x3e   : > { %p596_p8 = por %p595_p5, %p594_p3 }
  0x40   : > { %p597_p10 = pnand %p596_p8, %p590_p1 }
  0xc3   : > { %v196_v11 = vpop.xlane.xlu0 %195 }
  0xc4   : > { %v197_v12 = vmul.f32 0.00390625, %v196_v11 }
  0xc6   : > { %v205_v13 = vrot.slane %v197_v12, %v204_v10 }
  0xc8   : > { %498 = vmatmul.mubr.msk.f32.vlgmr.msra.gmra.mxu0 %vm206_vm2, %v205_v13 }
 0x188   : > { %v278_v15 = vpop.f32.mrf.mxu0 }
 0x189   : > { %v282_v16 = vmax.f32 %v278_v15, 0.0 }
 0x18a   : > { %v499_v17 = vpop.f32.mrf.mxu0 }
 0x18b   : > { %503 = vmatmul.mubr.msk.f32.vlgmr.msra.gmra.mxu1 %vm284_vm4, %v282_v16 }
 0x24b   : > { %v358_v18 = vpop.f32.mrf.mxu1 }
 0x24c   : > { %v362_v19 = vsub.f32 0.0, %v358_v18 }
 0x24d   : > { %v504_v20 = vpop.f32.mrf.mxu1 }
 0x24e   : > { %v363_v21 = vmul.f32 1.442695, %v362_v19 }
 0x250   : > { %555 = vpow2.f32 %v363_v21 }
 0x25d   : > { %v556_v22 = vpop.eup %555 }
 0x25e   : > { %v365_v23 = vadd.f32 1.0, %v556_v22 }
 0x260   : > { %557 = vrcp.f32 %v365_v23 }
 0x26d   : > { %v558_v25 = vpop.eup %557 }
 0x26e   : > { %v371_v26 = vrot.slane %v558_v25, %v370_v24 }
 0x270   : > { %373 = vbcast.lane.b32.xlu0 %v371_v26, 256 }
 0x2e2   : > { %v374_v31 = vpop.permute.xlu0 %373 }
 0x2e3   : > { %v382_v32 = vrot.slane %v374_v31, %v381_v30 }
 0x2e5   : > { %v384_v33 = vmul.f32 %v382_v32, %v187_v0 }
 0x2e7   : > { %385 = vst [vmem:[%s186_s10] sm:$0xff] %v384_v33 }
 0x2e8   : > { %600 = shalt.err (!%p597_p10)
}
 0x2e9   : > { %s601_s30 = scalar_lea.hbm %s399_s20, 128  ;;  %s605_s7 = scalar_lea.hbm %s832_s3, 256 }
 0x2ea   : > { %p602_p2 = scmp.ne.s32.totalorder %s399_s20, %s601_s30  ;;  %p606_p7 = scmp.lt.s32.totalorder %s399_s20, %s832_s3 }
 0x2eb   : > { %p607_p0 = scmp.lt.s32.totalorder %s605_s7, %s601_s30 }
 0x2ec   : > { %p603_p4 = pnand %p602_p2, %p843_p12 }
 0x2ed   : > { %p608_p6 = por %p607_p0, %p606_p7 }
 0x2ee   : > { %p604_p9 = pneg %p603_p4 }
 0x2f0   : > { %p609_p11 = pnand %p608_p6, %p604_p9 }
 0x2f2   : > { %612 = shalt.err (!%p609_p11)
}
 0x2f3   : > { %507 = dma.vmem_to_hbm [thread:$0]  (%p843_p12), %s402_s11, 128, %s399_s20, %s387_s22  }
 0x2f4 PF: > { %s413_s23 = sand.u32 1, %s639_s12   ;;  %p844_p13 = scmp.ne.s32.totalorder %s838_s25, 0 }
 0x2f5   : > { %p845_p1 = scmp.ge.s32.totalorder %s651_s15, 2  ;;  %s414_s8 = scalar_lea.sflag [#allocation4], %s413_s23 }
 0x2f7   : > { %p514_p3 = pnand %p845_p1, %p844_p13 }
 0x2f9   : > { %p515_p5 = pneg %p514_p3 }
 0x2fb   : > { %634 = dma.done.wait (%p515_p5), %s414_s8, 128  }
 0x2fc   : > { %636 = vsyncadd (%p515_p5), %s414_s8, 4294967168  ;;  %p16_p8 = scmp.ge.s32.totalorder %s703_s18, 4   ;;  %s846_s12 = smov %s643_s13 }
 0x2fd   : > { %s847_s13 = smov %s647_s14  ;;  %s848_s14 = smov %s715_s21 }
 0x2fe   : > { %s849_s15 = smov %s703_s18  ;;  %18 = sbr.rel (!%p16_p8) target bundleno = 5 (0x5), region = 77 }
 0x303   :  { %419 = vsyncpa [#allocation3], 1 }
 0x304   :  { %421 = vsyncpa [#allocation3 + $0x1], 1 }
 0x305   :  { %422 = vsyncpa [#allocation4], 1 }
 0x306   :  { %424 = vsyncpa [#allocation4 + $0x1], 1 }

</bundles_post_ra>
